<compile_context>
chip_gen: v6e
topology: v6e:2x2x1
jax: 0.10.0
libtpu: 0.0.40
codegen_flags: <defaults>
</compile_context>

<pallas_src>
import functools

import jax
import jax.numpy as jnp
from jax.experimental import pallas as pl
from jax.experimental.pallas import tpu as pltpu

LANE = 128  # TPU lane width


def _wordlstm_kernel(words_ref, emb_ref, w_ih_ref, w_hh_ref, b_ref,
                     w_out_ref, b_out_ref, out_ref, *, seq, block_b):
    vocab, _ = emb_ref.shape
    H = w_hh_ref.shape[0]
    P = out_ref.shape[-1]
    n_rows = seq * block_b

    # ---- embedding gather as one one-hot MXU matmul (time-major rows) ----
    # Out-of-range ids produce an all-zero embedding instead of an error
    # (PyTorch nn.Embedding would raise); fine for valid inputs.
    words_col = words_ref[0]                                    # (n_rows, 1) i32
    lane_iota = jax.lax.broadcasted_iota(jnp.int32, (n_rows, vocab), 1)
    one_hot = (lane_iota == words_col).astype(jnp.float32)      # (n_rows, vocab)
    x_emb = jnp.dot(one_hot, emb_ref[...],
                    preferred_element_type=jnp.float32)         # (n_rows, E) f32

    # ---- fused input projection + bias, hoisted out of the recurrence ----
    x_proj = (jnp.dot(x_emb.astype(jnp.bfloat16), w_ih_ref[...],
                      preferred_element_type=jnp.float32)
              + b_ref[...])                                     # (n_rows, 4H) f32

    w_hh = w_hh_ref[...]                                        # (H, 4H) bf16

    # ---- serial recurrence, fully unrolled; state stays f32 --------------
    h = jnp.zeros((block_b, H), jnp.float32)
    c = jnp.zeros((block_b, H), jnp.float32)
    hs = []
    for t in range(seq):
        gates = x_proj[t * block_b:(t + 1) * block_b, :]        # (block_b, 4H)
        if t > 0:  # h == 0 at t == 0, so the recurrent matmul is skipped there
            gates = gates + jnp.dot(h.astype(jnp.bfloat16), w_hh,
                                    preferred_element_type=jnp.float32)
        # 2 transcendental pushes over the full 4H-lane vreg, lane-slice gates
        sig_all = jax.nn.sigmoid(gates)
        tanh_all = jnp.tanh(gates)
        i_g = sig_all[:, 0 * H:1 * H]
        f_g = sig_all[:, 1 * H:2 * H]
        g_g = tanh_all[:, 2 * H:3 * H]
        o_g = sig_all[:, 3 * H:4 * H]
        c = f_g * c + i_g * g_g
        h = o_g * jnp.tanh(c)
        hs.append(h)
    hs_all = jnp.concatenate(hs, axis=0)                        # (n_rows, H)

    # ---- hidden2tag (lane-padded) + log_softmax ---------------------------
    tag = (jnp.dot(hs_all.astype(jnp.bfloat16), w_out_ref[...],
                   preferred_element_type=jnp.float32)
           + b_out_ref[...])                                    # (n_rows, P)
    m = jnp.max(tag, axis=1, keepdims=True)
    z = tag - m
    lse = jnp.log(jnp.sum(jnp.exp(z), axis=1, keepdims=True))
    out_ref[0] = z - lse


def word_lstm_forward_batched(sentences_words, params, *, block_b=8):
    """sentences_words: (B, seq) int32 -> (B, seq, tagset) log-softmax scores."""
    emb = params["emb"]
    w_ih = params["w_ih"]
    w_hh = params["w_hh"]
    b = params["b"]
    w_out = params["w_out"]
    b_out = params["b_out"]
    tagset = params["tagset"]

    B, seq = sentences_words.shape
    vocab, E = emb.shape
    H = w_hh.shape[0]
    P = w_out.shape[1]

    n_blocks = pl.cdiv(B, block_b)
    b_pad = n_blocks * block_b
    words = sentences_words.astype(jnp.int32)
    if b_pad != B:
        words = jnp.pad(words, ((0, b_pad - B), (0, 0)))
    # Time-major flat rows inside each block: row r = t*block_b + sentence.
    words3 = (words.reshape(n_blocks, block_b, seq)
                   .transpose(0, 2, 1)
                   .reshape(n_blocks, seq * block_b, 1))

    n_rows = seq * block_b
    kernel = functools.partial(_wordlstm_kernel, seq=seq, block_b=block_b)

    # VMEM budget (tiny here): weights + double-buffered block I/O + temporaries.
    weight_bytes = sum(int(a.size) * a.dtype.itemsize
                       for a in (emb, w_ih, w_hh, b, w_out, b_out))
    io_bytes = n_rows * (4 + P * 4)
    tmp_bytes = n_rows * (vocab + E + 4 * H + H + P) * 4
    vmem_limit = min(48 << 20, max(2 << 20,
                                   4 * (weight_bytes + 2 * io_bytes + tmp_bytes)))

    flops = n_blocks * (2 * n_rows * vocab * E
                        + 2 * n_rows * E * 4 * H
                        + 2 * (seq - 1) * block_b * H * 4 * H
                        + 2 * n_rows * H * P
                        + 10 * n_rows * H)
    transcendentals = n_blocks * (n_rows * 9 * H + n_rows * P)
    bytes_accessed = weight_bytes + n_blocks * io_bytes

    out = pl.pallas_call(
        kernel,
        out_shape=jax.ShapeDtypeStruct((n_blocks, n_rows, P), jnp.float32),
        grid=(n_blocks,),
        in_specs=[
            pl.BlockSpec((1, n_rows, 1), lambda g: (g, 0, 0)),   # word ids (time-major)
            pl.BlockSpec(emb.shape, lambda g: (0, 0)),           # embedding table
            pl.BlockSpec(w_ih.shape, lambda g: (0, 0)),          # fused W_ih (E, 4H) bf16
            pl.BlockSpec(w_hh.shape, lambda g: (0, 0)),          # fused W_hh (H, 4H) bf16
            pl.BlockSpec(b.shape, lambda g: (0, 0)),             # fused bias (1, 4H) f32
            pl.BlockSpec(w_out.shape, lambda g: (0, 0)),         # hidden2tag (H, P) bf16
            pl.BlockSpec(b_out.shape, lambda g: (0, 0)),         # hidden2tag bias (1, P) f32
        ],
        out_specs=pl.BlockSpec((1, n_rows, P), lambda g: (g, 0, 0)),
        compiler_params=pltpu.CompilerParams(
            dimension_semantics=("parallel",),
            vmem_limit_bytes=int(vmem_limit)),
        cost_estimate=pl.CostEstimate(flops=int(flops),
                                      transcendentals=int(transcendentals),
                                      bytes_accessed=int(bytes_accessed)),
    )(words3, emb, w_ih, w_hh, b, w_out, b_out)

    # Undo time-major layout and batch padding; drop padded tag lanes.
    out = (out.reshape(n_blocks, seq, block_b, P)
              .transpose(0, 2, 1, 3)
              .reshape(b_pad, seq, P))
    return out[:B, :, :tagset]


def word_lstm_forward(sentence_words, sentence_characters, params):
    """Single-sentence forward matching the PyTorch module's signature."""
    del sentence_characters  # unused by the PyTorch forward() as well
    return word_lstm_forward_batched(sentence_words[None, :], params)[0]


def init_params(key, vocab, emb_dim, hidden_dim, tagset):
    k_emb, k_wih, k_whh, k_bih, k_bhh, k_wo, k_bo = jax.random.split(key, 7)
    # Embedding ~ N(0, 1) (PyTorch nn.Embedding default), kept f32.
    emb = jax.random.normal(k_emb, (vocab, emb_dim), jnp.float32)

    # LSTM params ~ U(-1/sqrt(H), 1/sqrt(H)), PyTorch gate row order i, f, g, o.
    s = 1.0 / jnp.sqrt(hidden_dim)
    w_ih_pt = jax.random.uniform(k_wih, (4 * hidden_dim, emb_dim), jnp.float32, -s, s)
    w_hh_pt = jax.random.uniform(k_whh, (4 * hidden_dim, hidden_dim), jnp.float32, -s, s)
    b_ih = jax.random.uniform(k_bih, (4 * hidden_dim,), jnp.float32, -s, s)
    b_hh = jax.random.uniform(k_bhh, (4 * hidden_dim,), jnp.float32, -s, s)

    # Fused kernel layout: x @ W_ih -> (., 4H), gate columns i|f|g|o.
    # Matmul operands in bf16 (f32 accumulation in-kernel), biases in f32.
    w_ih = jnp.transpose(w_ih_pt).astype(jnp.bfloat16)          # (E, 4H)
    w_hh = jnp.transpose(w_hh_pt).astype(jnp.bfloat16)          # (H, 4H)
    b = (b_ih + b_hh).reshape(1, 4 * hidden_dim)                # (1, 4H) f32

    # hidden2tag ~ U(-1/sqrt(H), 1/sqrt(H)); pad tag columns to a 128-lane
    # multiple.  Padded bias columns are -1e30 so log_softmax ignores them.
    w_out_f = jax.random.uniform(k_wo, (hidden_dim, tagset), jnp.float32, -s, s)
    b_out_f = jax.random.uniform(k_bo, (tagset,), jnp.float32, -s, s)
    p = pl.cdiv(tagset, LANE) * LANE
    w_out = (jnp.zeros((hidden_dim, p), jnp.float32)
             .at[:, :tagset].set(w_out_f).astype(jnp.bfloat16))  # (H, P)
    b_out = (jnp.full((1, p), -1e30, jnp.float32)
             .at[0, :tagset].set(b_out_f))                       # (1, P)

    return dict(emb=emb, w_ih=w_ih, w_hh=w_hh, b=b,
                w_out=w_out, b_out=b_out, tagset=tagset)


if __name__ == "__main__":
    # Small, deterministic configuration.
    word_embedding_dim = 32
    word_hidden_dim = 32          # 4H = 128 == one full lane width
    word_vocab_size = 50
    tagset_size = 8
    seq_len = 8
    batch = 16                    # 2 grid blocks of 8 sentences

    key = jax.random.PRNGKey(0)
    k_params, k_words, k_chars = jax.random.split(key, 3)

    params = init_params(k_params, word_vocab_size, word_embedding_dim,
                         word_hidden_dim, tagset_size)

    batch_words = jax.random.randint(k_words, (batch, seq_len), 0,
                                     word_vocab_size, dtype=jnp.int32)
    # Unused by forward(); present only to mirror the PyTorch signature.
    sentence_characters = jax.random.randint(k_chars, (seq_len, 4), 0, 26,
                                             dtype=jnp.int32)

    # Batched call: B sentences per pallas_call, parallel grid over blocks.
    scores = jax.block_until_ready(word_lstm_forward_batched(batch_words, params))
    assert scores.shape == (batch, seq_len, tagset_size)
    assert scores.dtype == jnp.float32
    row_sums = jnp.exp(scores).sum(axis=-1)
    assert bool(jnp.all(jnp.abs(row_sums - 1.0) < 1e-3))

    # Single-sentence path (PyTorch forward() parity) must agree with batched.
    single = jax.block_until_ready(
        word_lstm_forward(batch_words[0], sentence_characters, params))
    assert single.shape == (seq_len, tagset_size)
    assert bool(jnp.allclose(single, scores[0], atol=1e-5, rtol=1e-5))

    print("KERNEL_OK")
</pallas_src>

<mosaic_0001>
module attributes {stable_mosaic.version = 11 : i64} {
  func.func @_wordlstm_kernel(%arg0: i32, %arg1: memref<1x64x1xi32, #tpu.memory_space<vmem>>, %arg2: memref<50x32xf32, #tpu.memory_space<vmem>>, %arg3: memref<32x128xbf16, #tpu.memory_space<vmem>>, %arg4: memref<32x128xbf16, #tpu.memory_space<vmem>>, %arg5: memref<1x128xf32, #tpu.memory_space<vmem>>, %arg6: memref<32x128xbf16, #tpu.memory_space<vmem>>, %arg7: memref<1x128xf32, #tpu.memory_space<vmem>>, %arg8: memref<1x64x128xf32, #tpu.memory_space<vmem>>) attributes {dimension_semantics = [#tpu.dimension_semantics<parallel>], iteration_bounds = array<i64: 2>, scalar_prefetch = 0 : i64, scratch_operands = 0 : i64, tpu.core_type = #tpu.core_type<tc>, window_params = [{transform_indices = @transform_0, window_bounds = array<i64: 1, 64, 1>}, {pipeline_mode = #tpu.pipeline_mode<synchronous>, transform_indices = @transform_1, window_bounds = array<i64: 50, 32>}, {pipeline_mode = #tpu.pipeline_mode<synchronous>, transform_indices = @transform_2, window_bounds = array<i64: 32, 128>}, {pipeline_mode = #tpu.pipeline_mode<synchronous>, transform_indices = @transform_3, window_bounds = array<i64: 32, 128>}, {pipeline_mode = #tpu.pipeline_mode<synchronous>, transform_indices = @transform_4, window_bounds = array<i64: 1, 128>}, {pipeline_mode = #tpu.pipeline_mode<synchronous>, transform_indices = @transform_5, window_bounds = array<i64: 32, 128>}, {pipeline_mode = #tpu.pipeline_mode<synchronous>, transform_indices = @transform_6, window_bounds = array<i64: 1, 128>}, {transform_indices = @transform_7, window_bounds = array<i64: 1, 64, 128>}]} {
    %c0 = arith.constant 0 : index
    %c0_0 = arith.constant 0 : index
    %c0_1 = arith.constant 0 : index
    %0 = vector.load %arg1[%c0, %c0_0, %c0_1] : memref<1x64x1xi32, #tpu.memory_space<vmem>>, vector<1x64x1xi32>
    %1 = vector.shape_cast %0 : vector<1x64x1xi32> to vector<64x1xi32>
    %2 = tpu.iota {dimensions = array<i32: 1>} : vector<64x50xi32>
    %3 = vector.broadcast %1 : vector<64x1xi32> to vector<64x50xi32>
    %4 = arith.cmpi eq, %2, %3 : vector<64x50xi32>
    %5 = arith.extui %4 : vector<64x50xi1> to vector<64x50xi32>
    %6 = arith.sitofp %5 : vector<64x50xi32> to vector<64x50xf32>
    %c0_2 = arith.constant 0 : index
    %c0_3 = arith.constant 0 : index
    %7 = vector.load %arg2[%c0_2, %c0_3] : memref<50x32xf32, #tpu.memory_space<vmem>>, vector<50x32xf32>
    %cst = arith.constant dense<0.000000e+00> : vector<64x32xf32>
    %8 = tpu.matmul %6, %7, %cst {dimension_numbers = #tpu.dot_dimension_numbers<[1], [0], [0], [1], [0, 0, 1, 1], [], []>} : vector<64x50xf32>, vector<50x32xf32>, vector<64x32xf32> -> vector<64x32xf32>
    %9 = arith.truncf %8 : vector<64x32xf32> to vector<64x32xbf16>
    %c0_4 = arith.constant 0 : index
    %c0_5 = arith.constant 0 : index
    %10 = vector.load %arg3[%c0_4, %c0_5] : memref<32x128xbf16, #tpu.memory_space<vmem>>, vector<32x128xbf16>
    %cst_6 = arith.constant dense<0.000000e+00> : vector<64x128xf32>
    %11 = tpu.matmul %9, %10, %cst_6 {dimension_numbers = #tpu.dot_dimension_numbers<[1], [0], [0], [1], [0, 0, 1, 1], [], []>} : vector<64x32xbf16>, vector<32x128xbf16>, vector<64x128xf32> -> vector<64x128xf32>
    %c0_7 = arith.constant 0 : index
    %c0_8 = arith.constant 0 : index
    %12 = vector.load %arg5[%c0_7, %c0_8] : memref<1x128xf32, #tpu.memory_space<vmem>>, vector<1x128xf32>
    %13 = vector.broadcast %12 : vector<1x128xf32> to vector<64x128xf32>
    %14 = arith.addf %11, %13 : vector<64x128xf32>
    %c0_9 = arith.constant 0 : index
    %c0_10 = arith.constant 0 : index
    %15 = vector.load %arg4[%c0_9, %c0_10] : memref<32x128xbf16, #tpu.memory_space<vmem>>, vector<32x128xbf16>
    %cst_11 = arith.constant 0.000000e+00 : f32
    %16 = vector.broadcast %cst_11 : f32 to vector<8x32xf32>
    %17 = vector.extract_strided_slice %14 {offsets = [0, 0], sizes = [8, 128], strides = [1, 1]} : vector<64x128xf32> to vector<8x128xf32>
    %18 = arith.negf %17 : vector<8x128xf32>
    %19 = math.exp %18 : vector<8x128xf32>
    %cst_12 = arith.constant 1.000000e+00 : f32
    %20 = vector.broadcast %cst_12 : f32 to vector<8x128xf32>
    %21 = arith.addf %20, %19 : vector<8x128xf32>
    %22 = arith.divf %20, %21 : vector<8x128xf32>
    %23 = math.tanh %17 : vector<8x128xf32>
    %24 = vector.extract_strided_slice %22 {offsets = [0, 0], sizes = [8, 32], strides = [1, 1]} : vector<8x128xf32> to vector<8x32xf32>
    %25 = vector.extract_strided_slice %22 {offsets = [0, 32], sizes = [8, 32], strides = [1, 1]} : vector<8x128xf32> to vector<8x32xf32>
    %26 = vector.extract_strided_slice %23 {offsets = [0, 64], sizes = [8, 32], strides = [1, 1]} : vector<8x128xf32> to vector<8x32xf32>
    %27 = vector.extract_strided_slice %22 {offsets = [0, 96], sizes = [8, 32], strides = [1, 1]} : vector<8x128xf32> to vector<8x32xf32>
    %28 = arith.mulf %25, %16 : vector<8x32xf32>
    %29 = arith.mulf %24, %26 : vector<8x32xf32>
    %30 = arith.addf %28, %29 : vector<8x32xf32>
    %31 = math.tanh %30 : vector<8x32xf32>
    %32 = arith.mulf %27, %31 : vector<8x32xf32>
    %33 = vector.extract_strided_slice %14 {offsets = [8, 0], sizes = [8, 128], strides = [1, 1]} : vector<64x128xf32> to vector<8x128xf32>
    %34 = arith.truncf %32 : vector<8x32xf32> to vector<8x32xbf16>
    %cst_13 = arith.constant dense<0.000000e+00> : vector<8x128xf32>
    %35 = tpu.matmul %34, %15, %cst_13 {dimension_numbers = #tpu.dot_dimension_numbers<[1], [0], [0], [1], [0, 0, 1, 1], [], []>} : vector<8x32xbf16>, vector<32x128xbf16>, vector<8x128xf32> -> vector<8x128xf32>
    %36 = arith.addf %33, %35 : vector<8x128xf32>
    %37 = arith.negf %36 : vector<8x128xf32>
    %38 = math.exp %37 : vector<8x128xf32>
    %cst_14 = arith.constant 1.000000e+00 : f32
    %39 = vector.broadcast %cst_14 : f32 to vector<8x128xf32>
    %40 = arith.addf %39, %38 : vector<8x128xf32>
    %41 = arith.divf %39, %40 : vector<8x128xf32>
    %42 = math.tanh %36 : vector<8x128xf32>
    %43 = vector.extract_strided_slice %41 {offsets = [0, 0], sizes = [8, 32], strides = [1, 1]} : vector<8x128xf32> to vector<8x32xf32>
    %44 = vector.extract_strided_slice %41 {offsets = [0, 32], sizes = [8, 32], strides = [1, 1]} : vector<8x128xf32> to vector<8x32xf32>
    %45 = vector.extract_strided_slice %42 {offsets = [0, 64], sizes = [8, 32], strides = [1, 1]} : vector<8x128xf32> to vector<8x32xf32>
    %46 = vector.extract_strided_slice %41 {offsets = [0, 96], sizes = [8, 32], strides = [1, 1]} : vector<8x128xf32> to vector<8x32xf32>
    %47 = arith.mulf %44, %30 : vector<8x32xf32>
    %48 = arith.mulf %43, %45 : vector<8x32xf32>
    %49 = arith.addf %47, %48 : vector<8x32xf32>
    %50 = math.tanh %49 : vector<8x32xf32>
    %51 = arith.mulf %46, %50 : vector<8x32xf32>
    %52 = vector.extract_strided_slice %14 {offsets = [16, 0], sizes = [8, 128], strides = [1, 1]} : vector<64x128xf32> to vector<8x128xf32>
    %53 = arith.truncf %51 : vector<8x32xf32> to vector<8x32xbf16>
    %cst_15 = arith.constant dense<0.000000e+00> : vector<8x128xf32>
    %54 = tpu.matmul %53, %15, %cst_15 {dimension_numbers = #tpu.dot_dimension_numbers<[1], [0], [0], [1], [0, 0, 1, 1], [], []>} : vector<8x32xbf16>, vector<32x128xbf16>, vector<8x128xf32> -> vector<8x128xf32>
    %55 = arith.addf %52, %54 : vector<8x128xf32>
    %56 = arith.negf %55 : vector<8x128xf32>
    %57 = math.exp %56 : vector<8x128xf32>
    %cst_16 = arith.constant 1.000000e+00 : f32
    %58 = vector.broadcast %cst_16 : f32 to vector<8x128xf32>
    %59 = arith.addf %58, %57 : vector<8x128xf32>
    %60 = arith.divf %58, %59 : vector<8x128xf32>
    %61 = math.tanh %55 : vector<8x128xf32>
    %62 = vector.extract_strided_slice %60 {offsets = [0, 0], sizes = [8, 32], strides = [1, 1]} : vector<8x128xf32> to vector<8x32xf32>
    %63 = vector.extract_strided_slice %60 {offsets = [0, 32], sizes = [8, 32], strides = [1, 1]} : vector<8x128xf32> to vector<8x32xf32>
    %64 = vector.extract_strided_slice %61 {offsets = [0, 64], sizes = [8, 32], strides = [1, 1]} : vector<8x128xf32> to vector<8x32xf32>
    %65 = vector.extract_strided_slice %60 {offsets = [0, 96], sizes = [8, 32], strides = [1, 1]} : vector<8x128xf32> to vector<8x32xf32>
    %66 = arith.mulf %63, %49 : vector<8x32xf32>
    %67 = arith.mulf %62, %64 : vector<8x32xf32>
    %68 = arith.addf %66, %67 : vector<8x32xf32>
    %69 = math.tanh %68 : vector<8x32xf32>
    %70 = arith.mulf %65, %69 : vector<8x32xf32>
    %71 = vector.extract_strided_slice %14 {offsets = [24, 0], sizes = [8, 128], strides = [1, 1]} : vector<64x128xf32> to vector<8x128xf32>
    %72 = arith.truncf %70 : vector<8x32xf32> to vector<8x32xbf16>
    %cst_17 = arith.constant dense<0.000000e+00> : vector<8x128xf32>
    %73 = tpu.matmul %72, %15, %cst_17 {dimension_numbers = #tpu.dot_dimension_numbers<[1], [0], [0], [1], [0, 0, 1, 1], [], []>} : vector<8x32xbf16>, vector<32x128xbf16>, vector<8x128xf32> -> vector<8x128xf32>
    %74 = arith.addf %71, %73 : vector<8x128xf32>
    %75 = arith.negf %74 : vector<8x128xf32>
    %76 = math.exp %75 : vector<8x128xf32>
    %cst_18 = arith.constant 1.000000e+00 : f32
    %77 = vector.broadcast %cst_18 : f32 to vector<8x128xf32>
    %78 = arith.addf %77, %76 : vector<8x128xf32>
    %79 = arith.divf %77, %78 : vector<8x128xf32>
    %80 = math.tanh %74 : vector<8x128xf32>
    %81 = vector.extract_strided_slice %79 {offsets = [0, 0], sizes = [8, 32], strides = [1, 1]} : vector<8x128xf32> to vector<8x32xf32>
    %82 = vector.extract_strided_slice %79 {offsets = [0, 32], sizes = [8, 32], strides = [1, 1]} : vector<8x128xf32> to vector<8x32xf32>
    %83 = vector.extract_strided_slice %80 {offsets = [0, 64], sizes = [8, 32], strides = [1, 1]} : vector<8x128xf32> to vector<8x32xf32>
    %84 = vector.extract_strided_slice %79 {offsets = [0, 96], sizes = [8, 32], strides = [1, 1]} : vector<8x128xf32> to vector<8x32xf32>
    %85 = arith.mulf %82, %68 : vector<8x32xf32>
    %86 = arith.mulf %81, %83 : vector<8x32xf32>
    %87 = arith.addf %85, %86 : vector<8x32xf32>
    %88 = math.tanh %87 : vector<8x32xf32>
    %89 = arith.mulf %84, %88 : vector<8x32xf32>
    %90 = vector.extract_strided_slice %14 {offsets = [32, 0], sizes = [8, 128], strides = [1, 1]} : vector<64x128xf32> to vector<8x128xf32>
    %91 = arith.truncf %89 : vector<8x32xf32> to vector<8x32xbf16>
    %cst_19 = arith.constant dense<0.000000e+00> : vector<8x128xf32>
    %92 = tpu.matmul %91, %15, %cst_19 {dimension_numbers = #tpu.dot_dimension_numbers<[1], [0], [0], [1], [0, 0, 1, 1], [], []>} : vector<8x32xbf16>, vector<32x128xbf16>, vector<8x128xf32> -> vector<8x128xf32>
    %93 = arith.addf %90, %92 : vector<8x128xf32>
    %94 = arith.negf %93 : vector<8x128xf32>
    %95 = math.exp %94 : vector<8x128xf32>
    %cst_20 = arith.constant 1.000000e+00 : f32
    %96 = vector.broadcast %cst_20 : f32 to vector<8x128xf32>
    %97 = arith.addf %96, %95 : vector<8x128xf32>
    %98 = arith.divf %96, %97 : vector<8x128xf32>
    %99 = math.tanh %93 : vector<8x128xf32>
    %100 = vector.extract_strided_slice %98 {offsets = [0, 0], sizes = [8, 32], strides = [1, 1]} : vector<8x128xf32> to vector<8x32xf32>
    %101 = vector.extract_strided_slice %98 {offsets = [0, 32], sizes = [8, 32], strides = [1, 1]} : vector<8x128xf32> to vector<8x32xf32>
    %102 = vector.extract_strided_slice %99 {offsets = [0, 64], sizes = [8, 32], strides = [1, 1]} : vector<8x128xf32> to vector<8x32xf32>
    %103 = vector.extract_strided_slice %98 {offsets = [0, 96], sizes = [8, 32], strides = [1, 1]} : vector<8x128xf32> to vector<8x32xf32>
    %104 = arith.mulf %101, %87 : vector<8x32xf32>
    %105 = arith.mulf %100, %102 : vector<8x32xf32>
    %106 = arith.addf %104, %105 : vector<8x32xf32>
    %107 = math.tanh %106 : vector<8x32xf32>
    %108 = arith.mulf %103, %107 : vector<8x32xf32>
    %109 = vector.extract_strided_slice %14 {offsets = [40, 0], sizes = [8, 128], strides = [1, 1]} : vector<64x128xf32> to vector<8x128xf32>
    %110 = arith.truncf %108 : vector<8x32xf32> to vector<8x32xbf16>
    %cst_21 = arith.constant dense<0.000000e+00> : vector<8x128xf32>
    %111 = tpu.matmul %110, %15, %cst_21 {dimension_numbers = #tpu.dot_dimension_numbers<[1], [0], [0], [1], [0, 0, 1, 1], [], []>} : vector<8x32xbf16>, vector<32x128xbf16>, vector<8x128xf32> -> vector<8x128xf32>
    %112 = arith.addf %109, %111 : vector<8x128xf32>
    %113 = arith.negf %112 : vector<8x128xf32>
    %114 = math.exp %113 : vector<8x128xf32>
    %cst_22 = arith.constant 1.000000e+00 : f32
    %115 = vector.broadcast %cst_22 : f32 to vector<8x128xf32>
    %116 = arith.addf %115, %114 : vector<8x128xf32>
    %117 = arith.divf %115, %116 : vector<8x128xf32>
    %118 = math.tanh %112 : vector<8x128xf32>
    %119 = vector.extract_strided_slice %117 {offsets = [0, 0], sizes = [8, 32], strides = [1, 1]} : vector<8x128xf32> to vector<8x32xf32>
    %120 = vector.extract_strided_slice %117 {offsets = [0, 32], sizes = [8, 32], strides = [1, 1]} : vector<8x128xf32> to vector<8x32xf32>
    %121 = vector.extract_strided_slice %118 {offsets = [0, 64], sizes = [8, 32], strides = [1, 1]} : vector<8x128xf32> to vector<8x32xf32>
    %122 = vector.extract_strided_slice %117 {offsets = [0, 96], sizes = [8, 32], strides = [1, 1]} : vector<8x128xf32> to vector<8x32xf32>
    %123 = arith.mulf %120, %106 : vector<8x32xf32>
    %124 = arith.mulf %119, %121 : vector<8x32xf32>
    %125 = arith.addf %123, %124 : vector<8x32xf32>
    %126 = math.tanh %125 : vector<8x32xf32>
    %127 = arith.mulf %122, %126 : vector<8x32xf32>
    %128 = vector.extract_strided_slice %14 {offsets = [48, 0], sizes = [8, 128], strides = [1, 1]} : vector<64x128xf32> to vector<8x128xf32>
    %129 = arith.truncf %127 : vector<8x32xf32> to vector<8x32xbf16>
    %cst_23 = arith.constant dense<0.000000e+00> : vector<8x128xf32>
    %130 = tpu.matmul %129, %15, %cst_23 {dimension_numbers = #tpu.dot_dimension_numbers<[1], [0], [0], [1], [0, 0, 1, 1], [], []>} : vector<8x32xbf16>, vector<32x128xbf16>, vector<8x128xf32> -> vector<8x128xf32>
    %131 = arith.addf %128, %130 : vector<8x128xf32>
    %132 = arith.negf %131 : vector<8x128xf32>
    %133 = math.exp %132 : vector<8x128xf32>
    %cst_24 = arith.constant 1.000000e+00 : f32
    %134 = vector.broadcast %cst_24 : f32 to vector<8x128xf32>
    %135 = arith.addf %134, %133 : vector<8x128xf32>
    %136 = arith.divf %134, %135 : vector<8x128xf32>
    %137 = math.tanh %131 : vector<8x128xf32>
    %138 = vector.extract_strided_slice %136 {offsets = [0, 0], sizes = [8, 32], strides = [1, 1]} : vector<8x128xf32> to vector<8x32xf32>
    %139 = vector.extract_strided_slice %136 {offsets = [0, 32], sizes = [8, 32], strides = [1, 1]} : vector<8x128xf32> to vector<8x32xf32>
    %140 = vector.extract_strided_slice %137 {offsets = [0, 64], sizes = [8, 32], strides = [1, 1]} : vector<8x128xf32> to vector<8x32xf32>
    %141 = vector.extract_strided_slice %136 {offsets = [0, 96], sizes = [8, 32], strides = [1, 1]} : vector<8x128xf32> to vector<8x32xf32>
    %142 = arith.mulf %139, %125 : vector<8x32xf32>
    %143 = arith.mulf %138, %140 : vector<8x32xf32>
    %144 = arith.addf %142, %143 : vector<8x32xf32>
    %145 = math.tanh %144 : vector<8x32xf32>
    %146 = arith.mulf %141, %145 : vector<8x32xf32>
    %147 = vector.extract_strided_slice %14 {offsets = [56, 0], sizes = [8, 128], strides = [1, 1]} : vector<64x128xf32> to vector<8x128xf32>
    %148 = arith.truncf %146 : vector<8x32xf32> to vector<8x32xbf16>
    %cst_25 = arith.constant dense<0.000000e+00> : vector<8x128xf32>
    %149 = tpu.matmul %148, %15, %cst_25 {dimension_numbers = #tpu.dot_dimension_numbers<[1], [0], [0], [1], [0, 0, 1, 1], [], []>} : vector<8x32xbf16>, vector<32x128xbf16>, vector<8x128xf32> -> vector<8x128xf32>
    %150 = arith.addf %147, %149 : vector<8x128xf32>
    %151 = arith.negf %150 : vector<8x128xf32>
    %152 = math.exp %151 : vector<8x128xf32>
    %cst_26 = arith.constant 1.000000e+00 : f32
    %153 = vector.broadcast %cst_26 : f32 to vector<8x128xf32>
    %154 = arith.addf %153, %152 : vector<8x128xf32>
    %155 = arith.divf %153, %154 : vector<8x128xf32>
    %156 = math.tanh %150 : vector<8x128xf32>
    %157 = vector.extract_strided_slice %155 {offsets = [0, 0], sizes = [8, 32], strides = [1, 1]} : vector<8x128xf32> to vector<8x32xf32>
    %158 = vector.extract_strided_slice %155 {offsets = [0, 32], sizes = [8, 32], strides = [1, 1]} : vector<8x128xf32> to vector<8x32xf32>
    %159 = vector.extract_strided_slice %156 {offsets = [0, 64], sizes = [8, 32], strides = [1, 1]} : vector<8x128xf32> to vector<8x32xf32>
    %160 = vector.extract_strided_slice %155 {offsets = [0, 96], sizes = [8, 32], strides = [1, 1]} : vector<8x128xf32> to vector<8x32xf32>
    %161 = arith.mulf %158, %144 : vector<8x32xf32>
    %162 = arith.mulf %157, %159 : vector<8x32xf32>
    %163 = arith.addf %161, %162 : vector<8x32xf32>
    %164 = math.tanh %163 : vector<8x32xf32>
    %165 = arith.mulf %160, %164 : vector<8x32xf32>
    %166 = tpu.concatenate %32, %51, %70, %89, %108, %127, %146, %165 in 0 : vector<8x32xf32>, vector<8x32xf32>, vector<8x32xf32>, vector<8x32xf32>, vector<8x32xf32>, vector<8x32xf32>, vector<8x32xf32>, vector<8x32xf32> -> vector<64x32xf32>
    %167 = arith.truncf %166 : vector<64x32xf32> to vector<64x32xbf16>
    %c0_27 = arith.constant 0 : index
    %c0_28 = arith.constant 0 : index
    %168 = vector.load %arg6[%c0_27, %c0_28] : memref<32x128xbf16, #tpu.memory_space<vmem>>, vector<32x128xbf16>
    %cst_29 = arith.constant dense<0.000000e+00> : vector<64x128xf32>
    %169 = tpu.matmul %167, %168, %cst_29 {dimension_numbers = #tpu.dot_dimension_numbers<[1], [0], [0], [1], [0, 0, 1, 1], [], []>} : vector<64x32xbf16>, vector<32x128xbf16>, vector<64x128xf32> -> vector<64x128xf32>
    %c0_30 = arith.constant 0 : index
    %c0_31 = arith.constant 0 : index
    %170 = vector.load %arg7[%c0_30, %c0_31] : memref<1x128xf32, #tpu.memory_space<vmem>>, vector<1x128xf32>
    %171 = vector.broadcast %170 : vector<1x128xf32> to vector<64x128xf32>
    %172 = arith.addf %169, %171 : vector<64x128xf32>
    %cst_32 = arith.constant dense<0xFF800000> : vector<64xf32>
    %173 = vector.multi_reduction <maximumf>, %172, %cst_32 [1] : vector<64x128xf32> to vector<64xf32>
    %174 = vector.shape_cast %173 : vector<64xf32> to vector<64x1xf32>
    %175 = vector.broadcast %174 : vector<64x1xf32> to vector<64x128xf32>
    %176 = arith.subf %172, %175 : vector<64x128xf32>
    %177 = math.exp %176 : vector<64x128xf32>
    %cst_33 = arith.constant dense<0.000000e+00> : vector<64xf32>
    %178 = vector.multi_reduction <add>, %177, %cst_33 [1] : vector<64x128xf32> to vector<64xf32>
    %179 = vector.shape_cast %178 : vector<64xf32> to vector<64x1xf32>
    %180 = math.log %179 : vector<64x1xf32>
    %181 = vector.broadcast %180 : vector<64x1xf32> to vector<64x128xf32>
    %182 = arith.subf %176, %181 : vector<64x128xf32>
    %c0_34 = arith.constant 0 : index
    %c0_35 = arith.constant 0 : index
    %c0_36 = arith.constant 0 : index
    %183 = vector.load %arg8[%c0_34, %c0_35, %c0_36] : memref<1x64x128xf32, #tpu.memory_space<vmem>>, vector<1x64x128xf32>
    %184 = vector.shape_cast %183 : vector<1x64x128xf32> to vector<64x128xf32>
    %185 = vector.shape_cast %182 : vector<64x128xf32> to vector<1x64x128xf32>
    tpu.vector_store %arg8[%c0_34, %c0_35, %c0_36], %185 {strides = array<i32>} : memref<1x64x128xf32, #tpu.memory_space<vmem>>, vector<1x64x128xf32>,
    return
  }
  func.func @transform_0(%arg0: i32) -> (i32, i32, i32) {
    %c0_i32 = arith.constant 0 : i32
    %c0_i32_0 = arith.constant 0 : i32
    %c0_i32_1 = arith.constant 0 : i32
    return %arg0, %c0_i32, %c0_i32_0 : i32, i32, i32
  }
  func.func @transform_1(%arg0: i32) -> (i32, i32) {
    %c0_i32 = arith.constant 0 : i32
    %c0_i32_0 = arith.constant 0 : i32
    %c0_i32_1 = arith.constant 0 : i32
    return %c0_i32, %c0_i32_0 : i32, i32
  }
  func.func @transform_2(%arg0: i32) -> (i32, i32) {
    %c0_i32 = arith.constant 0 : i32
    %c0_i32_0 = arith.constant 0 : i32
    %c0_i32_1 = arith.constant 0 : i32
    return %c0_i32, %c0_i32_0 : i32, i32
  }
  func.func @transform_3(%arg0: i32) -> (i32, i32) {
    %c0_i32 = arith.constant 0 : i32
    %c0_i32_0 = arith.constant 0 : i32
    %c0_i32_1 = arith.constant 0 : i32
    return %c0_i32, %c0_i32_0 : i32, i32
  }
  func.func @transform_4(%arg0: i32) -> (i32, i32) {
    %c0_i32 = arith.constant 0 : i32
    %c0_i32_0 = arith.constant 0 : i32
    %c0_i32_1 = arith.constant 0 : i32
    return %c0_i32, %c0_i32_0 : i32, i32
  }
  func.func @transform_5(%arg0: i32) -> (i32, i32) {
    %c0_i32 = arith.constant 0 : i32
    %c0_i32_0 = arith.constant 0 : i32
    %c0_i32_1 = arith.constant 0 : i32
    return %c0_i32, %c0_i32_0 : i32, i32
  }
  func.func @transform_6(%arg0: i32) -> (i32, i32) {
    %c0_i32 = arith.constant 0 : i32
    %c0_i32_0 = arith.constant 0 : i32
    %c0_i32_1 = arith.constant 0 : i32
    return %c0_i32, %c0_i32_0 : i32, i32
  }
  func.func @transform_7(%arg0: i32) -> (i32, i32, i32) {
    %c0_i32 = arith.constant 0 : i32
    %c0_i32_0 = arith.constant 0 : i32
    %c0_i32_1 = arith.constant 0 : i32
    return %arg0, %c0_i32, %c0_i32_0 : i32, i32, i32
  }
}

</mosaic_0001>

<bundles_post_ra>
// kernel: tpu_custom_call.1
= control target key start
LH: loop header
LB: loop body
LE: loop exit
PB: predicated region body
PF: predicated region fallthrough
CT: control target
= control target key end

     0   :  { %12 = vsyncpa [#allocation3], 0  ;;  %s2237_s0 = inlined_call_operand.vmem [shape: s32[2,64,1], index: 0, kind: input, shape index: {}]   ;;  %s2238_s1 = inlined_call_operand.vmem [shape: f32[50,32], index: 1, kind: input, shape index: {}]   ;;  %s2239_s2 = inlined_call_operand.vmem [shape: bf16[32,128], index: 2, kind: input, shape index: {}]   ;;  %s2240_s3 = inlined_call_operand.vmem [shape: bf16[32,128], index: 3, kind: input, shape index: {}]   ;;  %s2241_s4 = inlined_call_operand.vmem [shape: f32[1,128], index: 4, kind: input, shape index: {}]   ;;  %s2242_s5 = inlined_call_operand.vmem [shape: bf16[32,128], index: 5, kind: input, shape index: {}]   ;;  %s2243_s6 = inlined_call_operand.vmem [shape: f32[1,128], index: 6, kind: input, shape index: {}]   ;;  %s2244_s7 = inlined_call_operand.hbm [shape: f32[2,64,128], index: 7, kind: output, shape index: {}]  }
   0x1   :  { %14 = vsyncpa [#allocation3 + $0x1], 0  ;;  %s1882_s24 = smov 0   ;;  %s1884_s25 = smov 0  }
   0x2   :  { %s1886_s26 = smov 0   ;;  %s1888_s27 = smov 0  }
   0x3 LB: > { %s1903_s28 = sadd.s32 4294967295, %s1832_s27   ;;  %s1406_s29 = sadd.s32 4294967294, %s1832_s27   ;;  %s1832_s27 = sphi %s1888_s27, %s2250_s27   ;;  %s1828_s26 = sphi %s1886_s26, %s2249_s26   ;;  %s1824_s25 = sphi %s1884_s25, %s2248_s25   ;;  %s1820_s24 = sphi %s1882_s24, %s2247_s24  }
   0x4   : > { %s1907_s30 = sadd.s32 1, %s1832_s27   ;;  %s179_s8 = sadd.s32 1, %s1828_s26 }
   0x5   : > { %s176_s9 = ssub.s32 %s1832_s27, %s1907_s30  ;;  %p189_p0 = scmp.ne.s32.totalorder %s1828_s26, %s1824_s25 }
   0x6   : > { %p177_p1 = scmp.eq.s32.totalorder %s176_s9, 0  ;;  %p190_p2 = scmp.eq.s32.totalorder %s1903_s28, 1 }
   0x7   : > { %p195_p3 = scmp.ne.s32.totalorder %s1824_s25, %s1820_s24  ;;  %p196_p4 = scmp.eq.s32.totalorder %s1406_s29, 1 }
   0x8   : > { %s1918_s10 = scalar_select %p177_p1, %s1828_s26, %s179_s8  }
   0x9   : > { %p1920_p5 = por %p190_p2, %p189_p0  ;;  %p1924_p6 = por %p196_p4, %p195_p3 }
   0xa   : > { %p1409_p7 = scmp.ge.s32.totalorder %s1832_s27, 1  ;;  %p240_p8 = scmp.lt.s32.totalorder %s1832_s27, 3 }
   0xc   : > { %p241_p9 = pnand %p1409_p7, %p240_p8 }
   0xd   : > { %p272_p10 = scmp.lt.s32.totalorder (!%p241_p9), %s1903_s28, 1  ;;  %s1836_s29 = smov (!%p241_p9), 64  }
   0xe   : > { %244 = sbr.rel (%p241_p9) target bundleno = 6417 (0x1911), region = 48  ;;  %s1837_s8 = smov (!%p241_p9), 32  }
   0xf   : > { %s269_s22 = sand.u32 (!%p241_p9), 1, %s1824_s25  }
  0x13   : > { %v342_v0 = vld [vmem:[%s2238_s1 + $0x30] sm:$0x3]  ;;  %vm368_vm0 = vcmask 1041408   ;;  %v1834_v1 = vmov 0   ;;  %v341_v2 = vld [vmem:[%s2238_s1 + $0x28] sm:$0xff]  ;;  %s273_s17 = scalar_select %p272_p10, %s1903_s28, 1  ;;  %v286_v17 = vlaneseq }
  0x14   : > { %1669 = vset.pattern.permute.xlu1 %v1834_v1  ;;  %1668 = vset.pattern.permute.xlu0 %v1834_v1  ;;  %v340_v3 = vld [vmem:[%s2238_s1 + $0x20] sm:$0xff]  ;;  %v339_v6 = vld [vmem:[%s2238_s1 + $0x18] sm:$0xff]  ;;  %v338_v9 = vld [vmem:[%s2238_s1 + $0x10] sm:$0xff]  ;;  %v1835_v16 = vmov 0.0   ;;  %vm343_vm1 = vcmask 408576   ;;  %vm504_vm10 = vcmask 261120  }
  0x15   : > { %1516 = vmatprep.subr.msk.mxu0 %vm368_vm0, %v342_v0  ;;  %s1466_s20 = sshll.u32 %s273_s17, 6  ;;  %v337_v10 = vld [vmem:[%s2238_s1 + $0x8] sm:$0xff]  ;;  %v336_v13 = vld [vmem:[%s2238_s1] sm:$0xff]  ;;  %v287_v18 = vand.u32 127, %v286_v17  ;;  %vm1838_vm11 = vmmov 0   ;;  %s1839_s17 = smov [#allocation2]  }
  0x16   : > { %1517 = vmatpush3.msk.msra.mxu0 %vm368_vm0, %v342_v0  ;;  %s276_s23 = scalar_lea.vmem %s2237_s0, %s1466_s20  ;;  %v1670_v35 = vld [vmem:[%s2239_s2 + $0x8] sm:$0xff]   ;;  %v1671_v36 = vld [vmem:[%s2239_s2] sm:$0xff]   ;;  %s1776_s18 = sshll.u32 %s1839_s17, 4  ;;  %s1777_s18 = int_to_ptr.vmem [resolvable:$false] %s1776_s18 }
  0x17   : > { %1518 = vmatprep.subr.mxu0 %v341_v2  ;;  %v280_v4 = vld [vmem:[%s276_s23 + $0x10] sm:$0xff]  ;;  %v278_v5 = vld [vmem:[%s276_s23] sm:$0xff]  ;;  %v281_v7 = vld [vmem:[%s276_s23 + $0x18] sm:$0xff]  ;;  %1542 = vmatprep.subr.bf16.mxu1 %v1670_v35  ;;  %s1778_s19 = scalar_lea.vmem %s1777_s18, 2048 }
  0x18   : > { %1519 = vmatpush3.msra.mxu0 %v341_v2  ;;  %295 = vperm.xlu1 %1669, %v280_v4   ;;  %v279_v8 = vld [vmem:[%s276_s23 + $0x8] sm:$0xff]  ;;  %v282_v12 = vld [vmem:[%s276_s23 + $0x20] sm:$0xff]  ;;  %v285_v14 = vld [vmem:[%s276_s23 + $0x38] sm:$0xff] }
  0x19   : > { %1520 = vmatprep.subr.mxu0 %v340_v3  ;;  %289 = vperm.xlu0 %1668, %v278_v5   ;;  %v283_v11 = vld [vmem:[%s276_s23 + $0x28] sm:$0xff]  ;;  %v284_v15 = vld [vmem:[%s276_s23 + $0x30] sm:$0xff]  ;;  %v1987_v49 = vld [vmem:[%s2241_s4] ss:$0 sm:$0xff]  ;;  %s1410_s23 = sshll.u32 %s269_s22, 6 }
  0x1a   : > { %1521 = vmatpush3.msra.mxu0 %v340_v3  ;;  %1543 = vmatpush3.bf16.msra.mxu1 %v1670_v35 }
  0x1b   : > { %1522 = vmatprep.subr.mxu0 %v339_v6  ;;  %1544 = vmatprep.subr.bf16.mxu1 %v1671_v36 }
  0x1c   : > { %1523 = vmatpush3.msra.mxu0 %v339_v6  ;;  %298 = vperm.xlu1 %1669, %v281_v7  }
  0x1d   : > { %292 = vperm.xlu0 %1668, %v279_v8   ;;  %1524 = vmatprep.subr.mxu0 %v338_v9 }
  0x1e   : > { %1525 = vmatpush3.msra.mxu0 %v338_v9  ;;  %1545 = vmatpush3.bf16.msra.mxu1 %v1671_v36  ;;  %v2010_v9 = vld [vmem:[%s2240_s3 + $0x8] sm:$0xff]  }
  0x1f   : > { %1526 = vmatprep.subr.mxu0 %v337_v10  ;;  %1554 = vmatprep.subr.bf16.mxu1 %v1835_v16 }
  0x20   : > { %304 = vperm.xlu1 %1669, %v283_v11   ;;  %1527 = vmatpush3.msra.mxu0 %v337_v10  ;;  %v2020_v10 = vld [vmem:[%s2240_s3] sm:$0xff]  }
  0x21   : > { %301 = vperm.xlu0 %1668, %v282_v12   ;;  %1528 = vmatprep.subr.mxu0 %v336_v13 }
  0x22   : > { %1529 = vmatpush3.msra.mxu0 %v336_v13 }
  0x23   : > { %1578 = vmatprep.subr.bf16.mxu0 %v1835_v16 }
  0x24   : > { %310 = vperm.xlu1 %1669, %v285_v14  }
  0x25   : > { %307 = vperm.xlu0 %1668, %v284_v15  }
  0x93   : > { %v296_v19 = vpop.permute.xlu1 %295 }
  0x94   : > { %v290_v20 = vpop.permute.xlu0 %289  ;;  %vm314_vm3 = vcmp.eq.s32.totalorder %v287_v18, %v296_v19 }
  0x95   : > { %vm312_vm2 = vcmp.eq.s32.totalorder %v287_v18, %v290_v20  ;;  %v1415_v24 = vsel %vm314_vm3, 1.0, %v1835_v16 }
  0x96   : > { %v1413_v21 = vsel %vm312_vm2, 1.0, %v1835_v16 }
  0x97   : > { %1530 = vmatprep.mubr.msk.f32.mxu0 %vm343_vm1, %v1413_v21  ;;  %v299_v22 = vpop.permute.xlu1 %298 }
  0x98   : > { %v293_v23 = vpop.permute.xlu0 %292  ;;  %vm315_vm5 = vcmp.eq.s32.totalorder %v287_v18, %v299_v22 }
  0x99   : > { %vm313_vm4 = vcmp.eq.s32.totalorder %v287_v18, %v293_v23  ;;  %v1416_v28 = vsel %vm315_vm5, 1.0, %v1835_v16 }
  0x9a   : > { %v1414_v25 = vsel %vm313_vm4, 1.0, %v1835_v16 }
  0x9b   : > { %1531 = vmatmul.mubr.msk.f32.vlgmr.msra.gmra.mxu0 %vm343_vm1, %v1414_v25  ;;  %v305_v26 = vpop.permute.xlu1 %304 }
  0x9c   : > { %1533 = vmatprep.mubr.msk.f32.mxu0 %vm343_vm1, %v1415_v24  ;;  %v302_v27 = vpop.permute.xlu0 %301  ;;  %vm317_vm7 = vcmp.eq.s32.totalorder %v287_v18, %v305_v26  ;;  %1579 = vmatpush3.bf16.msra.mxu0 %v2010_v9 }
  0x9d   : > { %vm316_vm6 = vcmp.eq.s32.totalorder %v287_v18, %v302_v27  ;;  %v1418_v32 = vsel %vm317_vm7, 1.0, %v1835_v16  ;;  %1580 = vmatprep.subr.bf16.mxu0 %v1835_v16 }
  0x9e   : > { %v1417_v29 = vsel %vm316_vm6, 1.0, %v1835_v16 }
  0x9f   : > { %1534 = vmatmul.mubr.msk.f32.gmra.mxu0 %vm343_vm1, %v1416_v28  ;;  %v311_v30 = vpop.permute.xlu1 %310 }
  0xa0   : > { %1536 = vmatprep.mubr.msk.f32.mxu0 %vm343_vm1, %v1417_v29  ;;  %v308_v31 = vpop.permute.xlu0 %307  ;;  %vm319_vm9 = vcmp.eq.s32.totalorder %v287_v18, %v311_v30  ;;  %1581 = vmatpush3.bf16.msra.mxu0 %v2020_v10 }
  0xa1   : > { %vm318_vm8 = vcmp.eq.s32.totalorder %v287_v18, %v308_v31  ;;  %v1420_v34 = vsel %vm319_vm9, 1.0, %v1835_v16  ;;  %1594 = vmatprep.subr.bf16.mxu0 %v1835_v16 }
  0xa2   : > { %v1419_v33 = vsel %vm318_vm8, 1.0, %v1835_v16 }
  0xa3   : > { %1537 = vmatmul.mubr.msk.f32.gmra.mxu0 %vm343_vm1, %v1418_v32 }
  0xa4   : > { %1539 = vmatprep.mubr.msk.f32.mxu0 %vm343_vm1, %v1419_v33 }
  0xa7   : > { %1540 = vmatmul.mubr.msk.f32.gmra.mxu0 %vm343_vm1, %v1420_v34 }
  0xa8   : > { %1582 = vmatprep.mubr.msk.bf16.mxu0 %vm1838_vm11, %v1835_v16 }
 0x15b   : > { %v1532_v37 = vpop.f32.mrf.mxu0 }
 0x15d   : > { %v438_v38 = vpop.f32.mrf.mxu0 }
 0x15e   : > { %v477_v39 = vpack.c.bf16 %v1532_v37, %v438_v38 }
 0x15f   : > { %v1535_v40 = vpop.f32.mrf.mxu0 }
 0x160   : > { %1546 = vmatprep.mubr.msk.bf16.mxu1 %vm504_vm10, %v477_v39 }
 0x161   : > { %v448_v41 = vpop.f32.mrf.mxu0 }
 0x162   : > { %v478_v42 = vpack.c.bf16 %v1535_v40, %v448_v41 }
 0x163   : > { %v1538_v43 = vpop.f32.mrf.mxu0 }
 0x164   : > { %1547 = vmatmul.mubr.msk.bf16.vlgmr.msra.gmra.mxu1 %vm504_vm10, %v478_v42 }
 0x165   : > { %v458_v44 = vpop.f32.mrf.mxu0  ;;  %1555 = vmatpush3.bf16.msra.mxu1 %v2010_v9 }
 0x166   : > { %v479_v45 = vpack.c.bf16 %v1538_v43, %v458_v44  ;;  %1556 = vmatprep.subr.bf16.mxu1 %v1835_v16 }
 0x167   : > { %v1541_v46 = vpop.f32.mrf.mxu0 }
 0x168   : > { %1550 = vmatprep.mubr.msk.bf16.mxu1 %vm504_vm10, %v479_v45 }
 0x169   : > { %v468_v47 = vpop.f32.mrf.mxu0  ;;  %1557 = vmatpush3.bf16.msra.mxu1 %v2020_v10 }
 0x16a   : > { %v480_v48 = vpack.c.bf16 %v1541_v46, %v468_v47  ;;  %1562 = vmatprep.subr.bf16.mxu1 %v1835_v16 }
 0x16c   : > { %1551 = vmatmul.mubr.msk.bf16.gmra.mxu1 %vm504_vm10, %v480_v48 }
 0x16d   : > { %1558 = vmatprep.mubr.msk.bf16.mxu1 %vm1838_vm11, %v1835_v16 }
 0x224   : > { %v1548_v50 = vpop.f32.mrf.mxu1 }
 0x225   : > { %v1990_v51 = vadd.f32 %v1548_v50, %v1987_v49 }
 0x226   : > { %v551_v52 = vpop.f32.mrf.mxu1 }
 0x227   : > { %v552_v53 = vadd.f32 %v1987_v49, %v551_v52 }
 0x228   : > { %v1549_v54 = vpop.f32.mrf.mxu1 }
 0x229   : > { %1676 = vtanh.f32 %v552_v53  ;;  %v1994_v55 = vadd.f32 %v1549_v54, %v1987_v49  ;;  %v1437_v0 = vmul.f32 -1.442695, %v552_v53 }
 0x22a   : > { %v554_v56 = vpop.f32.mrf.mxu1 }
 0x22b   : > { %1678 = vpow2.f32 %v1437_v0  ;;  %v555_v18 = vadd.f32 %v1987_v49, %v554_v56 }
 0x22c   : > { %v1552_v57 = vpop.f32.mrf.mxu1 }
 0x22d   : > { %v1997_v58 = vadd.f32 %v1552_v57, %v1987_v49 }
 0x22e   : > { %v567_v59 = vpop.f32.mrf.mxu1 }
 0x22f   : > { %v2000_v60 = vadd.f32 %v1987_v49, %v567_v59 }
 0x230   : > { %v1553_v61 = vpop.f32.mrf.mxu1 }
 0x231   : > { %v2003_v62 = vadd.f32 %v1553_v61, %v1987_v49 }
 0x232   : > { %v2042_v17 = vpop.f32.mrf.mxu1 }
 0x236   : > { %v1677_v63 = vpop.eup %1676 }
 0x237   : > { %595 = vrot.lane.b32.xlu0 %v1677_v63, %s1836_s29 }
 0x238   : > { %v1679_v1 = vpop.eup %1678 }
 0x239   : > { %v589_v2 = vadd.f32 1.0, %v1679_v1 }
 0x23b   : > { %1680 = vrcp.f32 %v589_v2 }
 0x248   : > { %v1681_v3 = vpop.eup %1680 }
 0x249   : > { %v593_v6 = vmul.f32 0.0, %v1681_v3 }
 0x2a9   : > { %v596_v4 = vpop.permute.xlu0 %595 }
 0x2aa   : > { %v598_v5 = vmul.f32 %v1681_v3, %v596_v4 }
 0x2ac   : > { %600 = vrot.lane.b32.xlu1 %v598_v5, %s1837_s8 }
 0x31e   : > { %v601_v7 = vpop.permute.xlu1 %600 }
 0x31f   : > { %v603_v8 = vadd.f32 %v601_v7, %v593_v6 }
 0x321   : > { %1682 = vtanh.f32 %v603_v8 }
 0x32e   : > { %v1683_v11 = vpop.eup %1682 }
 0x32f   : > { %606 = vrot.lane.b32.xlu0 %v1683_v11, %s1836_s29 }
 0x3a1   : > { %v607_v12 = vpop.permute.xlu0 %606 }
 0x3a2   : > { %v2030_v13 = vmul.f32 %v1681_v3, %v607_v12 }
 0x3a4   : > { %v610_v14 = vpack.c.bf16 %v2030_v13, %v2030_v13 }
 0x3a6   : > { %612 = vrot.lane.b32.xlu1 %v610_v14, %s1837_s8 }
 0x418   : > { %v613_v15 = vpop.permute.xlu1 %612 }
 0x419   : > { %1559 = vmatmul.mubr.msk.bf16.vlgmr.msra.gmra.mxu1 %vm504_vm10, %v613_v15 }
 0x41a   : > { %1563 = vmatpush3.bf16.msra.mxu1 %v2010_v9  ;;  %1566 = vmatprep.mubr.msk.bf16.mxu1 %vm1838_vm11, %v1835_v16 }
 0x41b   : > { %1564 = vmatprep.subr.bf16.mxu1 %v1835_v16 }
 0x41e   : > { %1565 = vmatpush3.bf16.msra.mxu1 %v2020_v10 }
 0x41f   : > { %1570 = vmatprep.subr.bf16.mxu1 %v1835_v16 }
 0x4d9   : > { %v663_v19 = vpop.f32.mrf.mxu1 }
 0x4da   : > { %v669_v20 = vadd.f32 %v663_v19, %v555_v18 }
 0x4db   : > { %v1560_v21 = vpop.f32.mrf.mxu1 }
 0x4dc   : > { %1684 = vtanh.f32 %v669_v20  ;;  %v1441_v25 = vmul.f32 -1.442695, %v669_v20 }
 0x4dd   : > { %v666_v22 = vpop.f32.mrf.mxu1 }
 0x4de   : > { %1686 = vpow2.f32 %v1441_v25 }
 0x4df   : > { %v1561_v23 = vpop.f32.mrf.mxu1 }
 0x4e9   : > { %v1685_v24 = vpop.eup %1684 }
 0x4ea   : > { %679 = vrot.lane.b32.xlu0 %v1685_v24, %s1836_s29 }
 0x4eb   : > { %v1687_v26 = vpop.eup %1686 }
 0x4ec   : > { %v673_v27 = vadd.f32 1.0, %v1687_v26 }
 0x4ee   : > { %1688 = vrcp.f32 %v673_v27 }
 0x4fb   : > { %v1689_v28 = vpop.eup %1688 }
 0x4fc   : > { %v677_v31 = vmul.f32 %v1689_v28, %v603_v8 }
 0x55c   : > { %v680_v29 = vpop.permute.xlu0 %679 }
 0x55d   : > { %v682_v30 = vmul.f32 %v1689_v28, %v680_v29 }
 0x55f   : > { %684 = vrot.lane.b32.xlu1 %v682_v30, %s1837_s8 }
 0x5d1   : > { %v685_v32 = vpop.permute.xlu1 %684 }
 0x5d2   : > { %v687_v33 = vadd.f32 %v685_v32, %v677_v31 }
 0x5d4   : > { %1690 = vtanh.f32 %v687_v33 }
 0x5e1   : > { %v1691_v34 = vpop.eup %1690 }
 0x5e2   : > { %690 = vrot.lane.b32.xlu0 %v1691_v34, %s1836_s29 }
 0x654   : > { %v691_v35 = vpop.permute.xlu0 %690 }
 0x655   : > { %v2048_v36 = vmul.f32 %v1689_v28, %v691_v35 }
 0x657   : > { %v694_v37 = vpack.c.bf16 %v2048_v36, %v2048_v36 }
 0x659   : > { %696 = vrot.lane.b32.xlu1 %v694_v37, %s1837_s8 }
 0x6cb   : > { %v697_v38 = vpop.permute.xlu1 %696 }
 0x6cc   : > { %1567 = vmatmul.mubr.msk.bf16.vlgmr.msra.gmra.mxu1 %vm504_vm10, %v697_v38 }
 0x6cd   : > { %1571 = vmatpush3.bf16.msra.mxu1 %v2010_v9  ;;  %1574 = vmatprep.mubr.msk.bf16.mxu1 %vm1838_vm11, %v1835_v16 }
 0x6ce   : > { %1572 = vmatprep.subr.bf16.mxu1 %v1835_v16 }
 0x6d1   : > { %1573 = vmatpush3.bf16.msra.mxu1 %v2020_v10 }
 0x6d2   : > { %1586 = vmatprep.subr.bf16.mxu1 %v1835_v16 }
 0x78c   : > { %v735_v39 = vpop.f32.mrf.mxu1 }
 0x78d   : > { %v741_v40 = vadd.f32 %v735_v39, %v1990_v51 }
 0x78e   : > { %v1568_v41 = vpop.f32.mrf.mxu1 }
 0x78f   : > { %1692 = vtanh.f32 %v741_v40  ;;  %v1443_v45 = vmul.f32 -1.442695, %v741_v40 }
 0x790   : > { %v738_v42 = vpop.f32.mrf.mxu1 }
 0x791   : > { %1694 = vpow2.f32 %v1443_v45 }
 0x792   : > { %v1569_v43 = vpop.f32.mrf.mxu1 }
 0x79c   : > { %v1693_v44 = vpop.eup %1692 }
 0x79d   : > { %751 = vrot.lane.b32.xlu0 %v1693_v44, %s1836_s29  ;;  %v571_v44 = vadd.f32 %v1987_v49, %v2042_v17 }
 0x79e   : > { %v1695_v46 = vpop.eup %1694 }
 0x79f   : > { %v745_v47 = vadd.f32 1.0, %v1695_v46 }
 0x7a1   : > { %1696 = vrcp.f32 %v745_v47 }
 0x7ae   : > { %v1697_v48 = vpop.eup %1696 }
 0x7af   : > { %v749_v53 = vmul.f32 %v1697_v48, %v687_v33 }
 0x80f   : > { %v752_v50 = vpop.permute.xlu0 %751 }
 0x810   : > { %v754_v52 = vmul.f32 %v1697_v48, %v752_v50 }
 0x812   : > { %756 = vrot.lane.b32.xlu1 %v754_v52, %s1837_s8 }
 0x884   : > { %v757_v54 = vpop.permute.xlu1 %756 }
 0x885   : > { %v759_v51 = vadd.f32 %v757_v54, %v749_v53 }
 0x887   : > { %1698 = vtanh.f32 %v759_v51 }
 0x894   : > { %v1699_v56 = vpop.eup %1698 }
 0x895   : > { %762 = vrot.lane.b32.xlu0 %v1699_v56, %s1836_s29 }
 0x907   : > { %v763_v57 = vpop.permute.xlu0 %762 }
 0x908   : > { %v2064_v59 = vmul.f32 %v1697_v48, %v763_v57 }
 0x90a   : > { %v766_v61 = vpack.c.bf16 %v2064_v59, %v2064_v59 }
 0x90c   : > { %768 = vrot.lane.b32.xlu1 %v766_v61, %s1837_s8 }
 0x97e   : > { %v769_v63 = vpop.permute.xlu1 %768 }
 0x97f   : > { %1575 = vmatmul.mubr.msk.bf16.vlgmr.msra.gmra.mxu1 %vm504_vm10, %v769_v63 }
 0x980   : > { %1587 = vmatpush3.bf16.msra.mxu1 %v2010_v9  ;;  %1590 = vmatprep.mubr.msk.bf16.mxu1 %vm1838_vm11, %v1835_v16 }
 0x981   : > { %1588 = vmatprep.subr.bf16.mxu1 %v1835_v16 }
 0x984   : > { %1589 = vmatpush3.bf16.msra.mxu1 %v2020_v10 }
 0x985   : > { %1602 = vmatprep.subr.bf16.mxu1 %v1835_v16 }
 0xa3f   : > { %v807_v0 = vpop.f32.mrf.mxu1 }
 0xa40   : > { %v813_v1 = vadd.f32 %v807_v0, %v1994_v55 }
 0xa41   : > { %v1576_v2 = vpop.f32.mrf.mxu1 }
 0xa42   : > { %1700 = vtanh.f32 %v813_v1  ;;  %v1445_v6 = vmul.f32 -1.442695, %v813_v1 }
 0xa43   : > { %v810_v3 = vpop.f32.mrf.mxu1 }
 0xa44   : > { %1702 = vpow2.f32 %v1445_v6 }
 0xa45   : > { %v1577_v4 = vpop.f32.mrf.mxu1 }
 0xa4f   : > { %v1701_v5 = vpop.eup %1700 }
 0xa50   : > { %823 = vrot.lane.b32.xlu0 %v1701_v5, %s1836_s29 }
 0xa51   : > { %v1703_v7 = vpop.eup %1702 }
 0xa52   : > { %v817_v8 = vadd.f32 1.0, %v1703_v7 }
 0xa54   : > { %1704 = vrcp.f32 %v817_v8 }
 0xa61   : > { %v1705_v11 = vpop.eup %1704 }
 0xa62   : > { %v821_v15 = vmul.f32 %v1705_v11, %v759_v51 }
 0xac2   : > { %v824_v12 = vpop.permute.xlu0 %823 }
 0xac3   : > { %v826_v14 = vmul.f32 %v1705_v11, %v824_v12 }
 0xac5   : > { %828 = vrot.lane.b32.xlu1 %v826_v14, %s1837_s8 }
 0xb37   : > { %v829_v18 = vpop.permute.xlu1 %828 }
 0xb38   : > { %v831_v55 = vadd.f32 %v829_v18, %v821_v15 }
 0xb3a   : > { %1706 = vtanh.f32 %v831_v55 }
 0xb47   : > { %v1707_v19 = vpop.eup %1706 }
 0xb48   : > { %834 = vrot.lane.b32.xlu0 %v1707_v19, %s1836_s29 }
 0xbba   : > { %v835_v20 = vpop.permute.xlu0 %834 }
 0xbbb   : > { %v2080_v21 = vmul.f32 %v1705_v11, %v835_v20 }
 0xbbd   : > { %v838_v22 = vpack.c.bf16 %v2080_v21, %v2080_v21 }
 0xbbf   : > { %840 = vrot.lane.b32.xlu1 %v838_v22, %s1837_s8 }
 0xc31   : > { %v841_v23 = vpop.permute.xlu1 %840 }
 0xc32   : > { %1583 = vmatmul.mubr.msk.bf16.vlgmr.msra.gmra.mxu0 %vm504_vm10, %v841_v23 }
 0xc33   : > { %1595 = vmatpush3.bf16.msra.mxu0 %v2010_v9  ;;  %1598 = vmatprep.mubr.msk.bf16.mxu0 %vm1838_vm11, %v1835_v16 }
 0xc34   : > { %1596 = vmatprep.subr.bf16.mxu0 %v1835_v16 }
 0xc37   : > { %1597 = vmatpush3.bf16.msra.mxu0 %v2020_v10 }
 0xcf2   : > { %v879_v24 = vpop.f32.mrf.mxu0 }
 0xcf3   : > { %v885_v25 = vadd.f32 %v879_v24, %v2000_v60 }
 0xcf4   : > { %v1584_v26 = vpop.f32.mrf.mxu0 }
 0xcf5   : > { %1708 = vtanh.f32 %v885_v25  ;;  %v1447_v30 = vmul.f32 -1.442695, %v885_v25 }
 0xcf6   : > { %v882_v27 = vpop.f32.mrf.mxu0 }
 0xcf7   : > { %1710 = vpow2.f32 %v1447_v30 }
 0xcf8   : > { %v1585_v28 = vpop.f32.mrf.mxu0 }
 0xd02   : > { %v1709_v29 = vpop.eup %1708 }
 0xd03   : > { %895 = vrot.lane.b32.xlu0 %v1709_v29, %s1836_s29 }
 0xd04   : > { %v1711_v31 = vpop.eup %1710 }
 0xd05   : > { %v889_v32 = vadd.f32 1.0, %v1711_v31 }
 0xd07   : > { %1712 = vrcp.f32 %v889_v32 }
 0xd14   : > { %v1713_v33 = vpop.eup %1712 }
 0xd15   : > { %v893_v37 = vmul.f32 %v1713_v33, %v831_v55 }
 0xd75   : > { %v896_v34 = vpop.permute.xlu0 %895 }
 0xd76   : > { %v898_v35 = vmul.f32 %v1713_v33, %v896_v34 }
 0xd78   : > { %900 = vrot.lane.b32.xlu1 %v898_v35, %s1837_s8 }
 0xdea   : > { %v901_v38 = vpop.permute.xlu1 %900 }
 0xdeb   : > { %v903_v60 = vadd.f32 %v901_v38, %v893_v37 }
 0xded   : > { %1714 = vtanh.f32 %v903_v60 }
 0xdfa   : > { %v1715_v39 = vpop.eup %1714 }
 0xdfb   : > { %906 = vrot.lane.b32.xlu0 %v1715_v39, %s1836_s29  ;;  %v1674_v39 = vld [vmem:[%s2242_s5 + $0x8] sm:$0xff]  }
 0xdfc   : > { %1610 = vmatprep.subr.bf16.mxu0 %v1674_v39 }
 0xe6d   : > { %v907_v40 = vpop.permute.xlu0 %906 }
 0xe6e   : > { %v2095_v41 = vmul.f32 %v1713_v33, %v907_v40 }
 0xe70   : > { %v910_v42 = vpack.c.bf16 %v2095_v41, %v2095_v41 }
 0xe72   : > { %912 = vrot.lane.b32.xlu1 %v910_v42, %s1837_s8 }
 0xee4   : > { %v913_v43 = vpop.permute.xlu1 %912 }
 0xee5   : > { %1591 = vmatmul.mubr.msk.bf16.vlgmr.msra.gmra.mxu1 %vm504_vm10, %v913_v43 }
 0xee6   : > { %1603 = vmatpush3.bf16.msra.mxu1 %v2010_v9  ;;  %1606 = vmatprep.mubr.msk.bf16.mxu1 %vm1838_vm11, %v1835_v16 }
 0xee7   : > { %1604 = vmatprep.subr.bf16.mxu1 %v1835_v16 }
 0xeea   : > { %1605 = vmatpush3.bf16.msra.mxu1 %v2020_v10 }
 0xfa5   : > { %v951_v45 = vpop.f32.mrf.mxu1 }
 0xfa6   : > { %v957_v46 = vadd.f32 %v951_v45, %v571_v44  ;;  %v1675_v44 = vld [vmem:[%s2242_s5] sm:$0xff]  }
 0xfa7   : > { %v1592_v47 = vpop.f32.mrf.mxu1 }
 0xfa8   : > { %1716 = vtanh.f32 %v957_v46  ;;  %v1449_v9 = vmul.f32 -1.442695, %v957_v46 }
 0xfa9   : > { %v954_v48 = vpop.f32.mrf.mxu1 }
 0xfaa   : > { %1718 = vpow2.f32 %v1449_v9 }
 0xfab   : > { %v1593_v50 = vpop.f32.mrf.mxu1 }
 0xfb5   : > { %v1717_v52 = vpop.eup %1716 }
 0xfb6   : > { %967 = vrot.lane.b32.xlu0 %v1717_v52, %s1836_s29 }
 0xfb7   : > { %v1719_v53 = vpop.eup %1718 }
 0xfb8   : > { %v961_v54 = vadd.f32 1.0, %v1719_v53 }
 0xfba   : > { %1720 = vrcp.f32 %v961_v54 }
 0xfc7   : > { %v1721_v16 = vpop.eup %1720 }
 0xfc8   : > { %v965_v49 = vmul.f32 %v1721_v16, %v903_v60 }
0x1028   : > { %v968_v51 = vpop.permute.xlu0 %967 }
0x1029   : > { %v970_v10 = vmul.f32 %v1721_v16, %v968_v51 }
0x102b   : > { %972 = vrot.lane.b32.xlu1 %v970_v10, %s1837_s8 }
0x109d   : > { %v973_v17 = vpop.permute.xlu1 %972 }
0x109e   : > { %v975_v56 = vadd.f32 %v973_v17, %v965_v49 }
0x10a0   : > { %1722 = vtanh.f32 %v975_v56 }
0x10ad   : > { %v1723_v57 = vpop.eup %1722 }
0x10ae   : > { %978 = vrot.lane.b32.xlu0 %v1723_v57, %s1836_s29 }
0x1120   : > { %v979_v61 = vpop.permute.xlu0 %978 }
0x1121   : > { %v981_v63 = vmul.f32 %v1721_v16, %v979_v61 }
0x1123   : > { %v982_v0 = vpack.c.bf16 %v981_v63, %v981_v63  ;;  %v1128_v60 = vpack.c.bf16 %v981_v63, %v2095_v41  ;;  %v1127_v41 = vpack.c.bf16 %v2080_v21, %v2064_v59  ;;  %v1454_v59 = vld [vmem:[%s2243_s6] ss:$0 sm:$0xff] }
0x1125   : > { %984 = vrot.lane.b32.xlu1 %v982_v0, %s1837_s8 }
0x1197   : > { %v985_v1 = vpop.permute.xlu1 %984 }
0x1198   : > { %1599 = vmatmul.mubr.msk.bf16.vlgmr.msra.gmra.mxu0 %vm504_vm10, %v985_v1 }
0x1199   : > { %1611 = vmatpush3.bf16.msra.mxu0 %v1674_v39 }
0x119a   : > { %1612 = vmatprep.subr.bf16.mxu0 %v1675_v44 }
0x119d   : > { %1613 = vmatpush3.bf16.msra.mxu0 %v1675_v44 }
0x1258   : > { %v1023_v2 = vpop.f32.mrf.mxu0 }
0x1259   : > { %v1029_v3 = vadd.f32 %v1023_v2, %v1997_v58 }
0x125a   : > { %v1600_v4 = vpop.f32.mrf.mxu0 }
0x125b   : > { %1724 = vtanh.f32 %v1029_v3  ;;  %v1451_v8 = vmul.f32 -1.442695, %v1029_v3 }
0x125c   : > { %v1026_v5 = vpop.f32.mrf.mxu0 }
0x125d   : > { %1726 = vpow2.f32 %v1451_v8 }
0x125e   : > { %v1601_v6 = vpop.f32.mrf.mxu0 }
0x1268   : > { %v1725_v7 = vpop.eup %1724 }
0x1269   : > { %1039 = vrot.lane.b32.xlu0 %v1725_v7, %s1836_s29 }
0x126a   : > { %v1727_v11 = vpop.eup %1726 }
0x126b   : > { %v1033_v12 = vadd.f32 1.0, %v1727_v11 }
0x126d   : > { %1728 = vrcp.f32 %v1033_v12 }
0x127a   : > { %v1729_v14 = vpop.eup %1728 }
0x127b   : > { %v1037_v55 = vmul.f32 %v1729_v14, %v975_v56 }
0x12db   : > { %v1040_v15 = vpop.permute.xlu0 %1039 }
0x12dc   : > { %v1042_v18 = vmul.f32 %v1729_v14, %v1040_v15 }
0x12de   : > { %1044 = vrot.lane.b32.xlu1 %v1042_v18, %s1837_s8 }
0x1350   : > { %v1045_v19 = vpop.permute.xlu1 %1044 }
0x1351   : > { %v1047_v58 = vadd.f32 %v1045_v19, %v1037_v55 }
0x1353   : > { %1730 = vtanh.f32 %v1047_v58 }
0x1360   : > { %v1731_v20 = vpop.eup %1730 }
0x1361   : > { %1050 = vrot.lane.b32.xlu0 %v1731_v20, %s1836_s29 }
0x13d3   : > { %v1051_v22 = vpop.permute.xlu0 %1050 }
0x13d4   : > { %v1053_v23 = vmul.f32 %v1729_v14, %v1051_v22 }
0x13d6   : > { %v1054_v24 = vpack.c.bf16 %v1053_v23, %v1053_v23 }
0x13d8   : > { %1056 = vrot.lane.b32.xlu1 %v1054_v24, %s1837_s8 }
0x144a   : > { %v1057_v25 = vpop.permute.xlu1 %1056 }
0x144b   : > { %1607 = vmatmul.mubr.msk.bf16.vlgmr.msra.gmra.mxu1 %vm504_vm10, %v1057_v25 }
0x150b   : > { %v1095_v26 = vpop.f32.mrf.mxu1 }
0x150c   : > { %v1101_v27 = vadd.f32 %v1095_v26, %v2003_v62  ;;  %v1126_v62 = vpack.c.bf16 %v2048_v36, %v2030_v13 }
0x150d   : > { %v1608_v28 = vpop.f32.mrf.mxu1 }
0x150e   : > { %1732 = vtanh.f32 %v1101_v27  ;;  %v1453_v32 = vmul.f32 -1.442695, %v1101_v27 }
0x150f   : > { %v1098_v29 = vpop.f32.mrf.mxu1 }
0x1510   : > { %1734 = vpow2.f32 %v1453_v32 }
0x1511   : > { %v1609_v30 = vpop.f32.mrf.mxu1 }
0x151b   : > { %v1733_v31 = vpop.eup %1732 }
0x151c   : > { %1111 = vrot.lane.b32.xlu0 %v1733_v31, %s1836_s29 }
0x151d   : > { %v1735_v33 = vpop.eup %1734 }
0x151e   : > { %v1105_v34 = vadd.f32 1.0, %v1735_v33 }
0x1520   : > { %1736 = vrcp.f32 %v1105_v34 }
0x152d   : > { %v1737_v35 = vpop.eup %1736 }
0x152e   : > { %v1109_v40 = vmul.f32 %v1737_v35, %v1047_v58 }
0x158e   : > { %v1112_v37 = vpop.permute.xlu0 %1111 }
0x158f   : > { %v1114_v38 = vmul.f32 %v1737_v35, %v1112_v37 }
0x1591   : > { %1116 = vrot.lane.b32.xlu1 %v1114_v38, %s1837_s8 }
0x1595   : > { %1145 = vrot.lane.b32.xlu1 %v1126_v62, %s1837_s8 }
0x1599   : > { %1149 = vrot.lane.b32.xlu1 %v1128_v60, %s1837_s8 }
0x1603   : > { %v1117_v42 = vpop.permute.xlu1 %1116 }
0x1604   : > { %v1119_v43 = vadd.f32 %v1117_v42, %v1109_v40 }
0x1606   : > { %1738 = vtanh.f32 %v1119_v43 }
0x1607   : > { %v1146_v13 = vpop.permute.xlu1 %1145 }
0x1608   : > { %1614 = vmatprep.mubr.msk.bf16.mxu0 %vm504_vm10, %v1146_v13 }
0x160b   : > { %v1150_v50 = vpop.permute.xlu1 %1149 }
0x1613   : > { %v1739_v36 = vpop.eup %1738 }
0x1614   : > { %1122 = vrot.lane.b32.xlu0 %v1739_v36, %s1836_s29  ;;  %s2169_s29 = scalar_lea.vmem [#allocation2], %s1410_s23 }
0x1615   : > { %s1344_s9 = sshll.u32 %s2169_s29, 4  ;;  %s2191_s9 = int_to_ptr.vmem [resolvable:$true] %s1344_s9 }
0x1616   : > { %s1772_s16 = scalar_lea.vmem %s2191_s9, 1024  ;;  %p1779_p0 = scmp.lt.s32.totalorder %s2191_s9, %s1777_s18 }
0x1617   : > { %p1773_p11 = scmp.ne.s32.totalorder %s2191_s9, %s1772_s16  ;;  %p1780_p1 = scmp.lt.s32.totalorder %s1778_s19, %s1772_s16 }
0x1618   : > { %1147 = vrot.lane.b32.xlu0 %v1127_v41, %s1837_s8 }
0x1619   : > { %p1774_p12 = pnand %p1773_p11, %p1920_p5  ;;  %p1781_p2 = por %p1780_p1, %p1779_p0 }
0x161b   : > { %p1775_p13 = pneg %p1774_p12 }
0x161d   : > { %p1782_p3 = pnand %p1781_p2, %p1775_p13 }
0x1686   : > { %v1123_v45 = vpop.permute.xlu0 %1122 }
0x1687   : > { %v1125_v46 = vmul.f32 %v1737_v35, %v1123_v45 }
0x1689   : > { %v1129_v47 = vpack.c.bf16 %v1125_v46, %v1053_v23 }
0x168a   : > { %v1148_v48 = vpop.permute.xlu0 %1147 }
0x168b   : > { %1151 = vrot.lane.b32.xlu0 %v1129_v47, %s1837_s8  ;;  %1615 = vmatmul.mubr.msk.bf16.vlgmr.msra.gmra.mxu0 %vm504_vm10, %v1148_v48  ;;  %s1467_s8 = sshll.u32 %s1903_s28, 10  ;;  %s2197_s28 = scalar_lea.sflag [#allocation3], %s269_s22 }
0x168c   : > { %1618 = vmatprep.mubr.msk.bf16.mxu0 %vm504_vm10, %v1150_v50  ;;  %s2189_s15 = scalar_lea.hbm %s2244_s7, %s1467_s8 }
0x16fd   : > { %v1152_v52 = vpop.permute.xlu0 %1151 }
0x16fe   : > { %1619 = vmatmul.mubr.msk.bf16.gmra.mxu0 %vm504_vm10, %v1152_v52 }
0x174b   : > { %v1616_v9 = vpop.f32.mrf.mxu0 }
0x174c   : > { %v1220_v49 = vadd.f32 %v1616_v9, %v1454_v59 }
0x174d   : > { %v1211_v21 = vpop.f32.mrf.mxu0 }
0x174e   : > { %v1212_v53 = vadd.f32 %v1454_v59, %v1211_v21 }
0x174f   : > { %v1617_v54 = vpop.f32.mrf.mxu0 }
0x1750   : > { %1242 = vmax.xlane.f32.xlu1 %v1212_v53  ;;  %v1223_v51 = vadd.f32 %v1617_v54, %v1454_v59 }
0x1751   : > { %v1214_v16 = vpop.f32.mrf.mxu0 }
0x1752   : > { %v1215_v10 = vadd.f32 %v1454_v59, %v1214_v16 }
0x1754   : > { %1244 = vmax.xlane.f32.xlu0 %v1215_v10  ;;  %1248 = vmax.xlane.f32.xlu1 %v1223_v51 }
0x1758   : > { %1246 = vmax.xlane.f32.xlu0 %v1220_v49 }
0x17be   : > { %v1620_v17 = vpop.f32.mrf.mxu0 }
0x17bf   : > { %v1236_v0 = vadd.f32 %v1620_v17, %v1454_v59 }
0x17c0   : > { %v1227_v56 = vpop.f32.mrf.mxu0 }
0x17c1   : > { %v1228_v57 = vadd.f32 %v1454_v59, %v1227_v56 }
0x17c2   : > { %v1621_v61 = vpop.f32.mrf.mxu0 }
0x17c3   : > { %1250 = vmax.xlane.f32.xlu0 %v1228_v57  ;;  %v1239_v2 = vadd.f32 %v1621_v61, %v1454_v59 }
0x17c4   : > { %v1230_v63 = vpop.f32.mrf.mxu0 }
0x17c5   : > { %v1231_v1 = vadd.f32 %v1454_v59, %v1230_v63 }
0x17c7   : > { %1252 = vmax.xlane.f32.xlu1 %v1231_v1  ;;  %1254 = vmax.xlane.f32.xlu0 %v1236_v0 }
0x17cb   : > { %1256 = vmax.xlane.f32.xlu1 %v1239_v2 }
0x17d9   : > { %v1243_v3 = vpop.xlane.xlu1 %1242 }
0x17da   : > { %v1258_v4 = vsub.f32 %v1212_v53, %v1243_v3 }
0x17dc   : > { %v1266_v5 = vmul.f32 1.442695, %v1258_v4 }
0x17dd   : > { %v1249_v6 = vpop.xlane.xlu1 %1248  ;;  %v1245_v7 = vpop.xlane.xlu0 %1244 }
0x17de   : > { %1740 = vpow2.f32 %v1266_v5  ;;  %v2145_v8 = vsub.f32 %v1215_v10, %v1245_v7  ;;  %v2147_v11 = vsub.f32 %v1223_v51, %v1249_v6 }
0x17e0   : > { %v1268_v12 = vmul.f32 1.442695, %v2145_v8  ;;  %v1272_v18 = vmul.f32 1.442695, %v2147_v11 }
0x17e1   : > { %v1247_v14 = vpop.xlane.xlu0 %1246 }
0x17e2   : > { %v2150_v15 = vsub.f32 %v1220_v49, %v1247_v14  ;;  %1742 = vpow2.f32 %v1268_v12 }
0x17e4   : > { %v1270_v55 = vmul.f32 1.442695, %v2150_v15 }
0x17e6   : > { %1744 = vpow2.f32 %v1270_v55 }
0x17e7   : > { %1746 = vpow2.f32 %v1272_v18 }
0x17eb   : > { %v1741_v19 = vpop.eup %1740 }
0x17ec   : > { %1282 = vadd.xlane.f32.xlu0 %v1741_v19 }
0x17ef   : > { %v1743_v58 = vpop.eup %1742 }
0x17f0   : > { %1284 = vadd.xlane.f32.xlu1 %v1743_v58 }
0x17f3   : > { %v1745_v20 = vpop.eup %1744 }
0x17f4   : > { %v1747_v22 = vpop.eup %1746  ;;  %1286 = vadd.xlane.f32.xlu0 %v1745_v20 }
0x17f5   : > { %1288 = vadd.xlane.f32.xlu1 %v1747_v22 }
0x184c   : > { %v1251_v23 = vpop.xlane.xlu0 %1250 }
0x184d   : > { %v2154_v24 = vsub.f32 %v1228_v57, %v1251_v23 }
0x184f   : > { %v1274_v25 = vmul.f32 1.442695, %v2154_v24 }
0x1850   : > { %v1253_v26 = vpop.xlane.xlu1 %1252  ;;  %v1255_v27 = vpop.xlane.xlu0 %1254 }
0x1851   : > { %1748 = vpow2.f32 %v1274_v25  ;;  %v2157_v28 = vsub.f32 %v1231_v1, %v1253_v26  ;;  %v2159_v29 = vsub.f32 %v1236_v0, %v1255_v27 }
0x1853   : > { %v1276_v30 = vmul.f32 1.442695, %v2157_v28  ;;  %v1278_v31 = vmul.f32 1.442695, %v2159_v29 }
0x1854   : > { %v1257_v32 = vpop.xlane.xlu1 %1256 }
0x1855   : > { %1750 = vpow2.f32 %v1276_v30  ;;  %v2163_v33 = vsub.f32 %v1239_v2, %v1257_v32 }
0x1856   : > { %1752 = vpow2.f32 %v1278_v31 }
0x1857   : > { %v1280_v34 = vmul.f32 1.442695, %v2163_v33 }
0x1859   : > { %1754 = vpow2.f32 %v1280_v34 }
0x185e   : > { %v1749_v35 = vpop.eup %1748 }
0x185f   : > { %1290 = vadd.xlane.f32.xlu0 %v1749_v35 }
0x1862   : > { %v1751_v37 = vpop.eup %1750 }
0x1863   : > { %v1753_v38 = vpop.eup %1752  ;;  %1292 = vadd.xlane.f32.xlu1 %v1751_v37 }
0x1864   : > { %1294 = vadd.xlane.f32.xlu0 %v1753_v38 }
0x1866   : > { %v1755_v62 = vpop.eup %1754 }
0x1867   : > { %1296 = vadd.xlane.f32.xlu1 %v1755_v62 }
0x1875   : > { %v1283_v60 = vpop.xlane.xlu0 %1282 }
0x1876   : > { %1756 = vlog2.f32 %v1283_v60 }
0x1879   : > { %v1285_v39 = vpop.xlane.xlu1 %1284 }
0x187a   : > { %1758 = vlog2.f32 %v1285_v39 }
0x187d   : > { %v1287_v40 = vpop.xlane.xlu0 %1286 }
0x187e   : > { %v1289_v42 = vpop.xlane.xlu1 %1288  ;;  %1760 = vlog2.f32 %v1287_v40 }
0x187f   : > { %1762 = vlog2.f32 %v1289_v42 }
0x1883   : > { %v1757_v43 = vpop.eup %1756 }
0x1884   : > { %v1299_v44 = vmul.f32 0.6931472, %v1757_v43 }
0x1886   : > { %v1314_v13 = vsub.f32 %v1258_v4, %v1299_v44 }
0x1887   : > { %v1759_v36 = vpop.eup %1758 }
0x1888   : > { %1322 = vst [vmem:[%s2169_s29] sm:$0xff] %v1314_v13  ;;  %v1301_v41 = vmul.f32 0.6931472, %v1759_v36 }
0x188a   : > { %v1315_v46 = vsub.f32 %v2145_v8, %v1301_v41 }
0x188b   : > { %v1761_v45 = vpop.eup %1760 }
0x188c   : > { %v1763_v47 = vpop.eup %1762  ;;  %v1303_v48 = vmul.f32 0.6931472, %v1761_v45  ;;  %1323 = vst [vmem:[%s2169_s29 + $0x8] sm:$0xff] %v1315_v46 }
0x188d   : > { %v1305_v50 = vmul.f32 0.6931472, %v1763_v47 }
0x188e   : > { %v1316_v52 = vsub.f32 %v2150_v15, %v1303_v48 }
0x188f   : > { %v1317_v9 = vsub.f32 %v2147_v11, %v1305_v50 }
0x1890   : > { %1324 = vst [vmem:[%s2169_s29 + $0x10] sm:$0xff] %v1316_v52 }
0x1891   : > { %1325 = vst [vmem:[%s2169_s29 + $0x18] sm:$0xff] %v1317_v9 }
0x18e8   : > { %v1291_v59 = vpop.xlane.xlu0 %1290 }
0x18e9   : > { %1764 = vlog2.f32 %v1291_v59 }
0x18ec   : > { %v1293_v21 = vpop.xlane.xlu1 %1292 }
0x18ed   : > { %1766 = vlog2.f32 %v1293_v21  ;;  %v1295_v53 = vpop.xlane.xlu0 %1294 }
0x18ee   : > { %1768 = vlog2.f32 %v1295_v53 }
0x18f0   : > { %v1297_v54 = vpop.xlane.xlu1 %1296 }
0x18f1   : > { %1770 = vlog2.f32 %v1297_v54 }
0x18f6   : > { %v1765_v16 = vpop.eup %1764 }
0x18f7   : > { %v1307_v51 = vmul.f32 0.6931472, %v1765_v16 }
0x18f9   : > { %v1318_v10 = vsub.f32 %v2154_v24, %v1307_v51 }
0x18fa   : > { %v1767_v49 = vpop.eup %1766 }
0x18fb   : > { %v1769_v17 = vpop.eup %1768  ;;  %1326 = vst [vmem:[%s2169_s29 + $0x20] sm:$0xff] %v1318_v10  ;;  %v1309_v56 = vmul.f32 0.6931472, %v1767_v49 }
0x18fc   : > { %v1311_v57 = vmul.f32 0.6931472, %v1769_v17 }
0x18fd   : > { %v1319_v61 = vsub.f32 %v2157_v28, %v1309_v56 }
0x18fe   : > { %v1771_v63 = vpop.eup %1770  ;;  %v1320_v0 = vsub.f32 %v2159_v29, %v1311_v57 }
0x18ff   : > { %1327 = vst [vmem:[%s2169_s29 + $0x28] sm:$0xff] %v1319_v61  ;;  %v1313_v1 = vmul.f32 0.6931472, %v1771_v63 }
0x1900   : > { %1328 = vst [vmem:[%s2169_s29 + $0x30] sm:$0xff] %v1320_v0 }
0x1901   : > { %v1321_v2 = vsub.f32 %v2163_v33, %v1313_v1 }
0x1903   : > { %1329 = vst [vmem:[%s2169_s29 + $0x38] sm:$0xff] %v1321_v2 }
0x1904   : > { %1785 = shalt.err (!%p1782_p3)
}
0x1905   : > { %s1786_s20 = scalar_lea.hbm %s2189_s15, 1024  ;;  %s1790_s23 = scalar_lea.hbm %s2244_s7, 2048 }
0x1906   : > { %p1787_p4 = scmp.ne.s32.totalorder %s2189_s15, %s1786_s20  ;;  %p1791_p9 = scmp.lt.s32.totalorder %s2189_s15, %s2244_s7 }
0x1907   : > { %p1792_p10 = scmp.lt.s32.totalorder %s1790_s23, %s1786_s20 }
0x1908   : > { %p1788_p7 = pnand %p1787_p4, %p1920_p5 }
0x1909   : > { %p1793_p11 = por %p1792_p10, %p1791_p9 }
0x190a   : > { %p1789_p8 = pneg %p1788_p7 }
0x190c   : > { %p1794_p12 = pnand %p1793_p11, %p1789_p8 }
0x190e   : > { %1797 = shalt.err (!%p1794_p12)
}
0x190f   : > { %s1840_s13 = smov 128   ;;  %s1841_s14 = smov 8  }
0x1910   : > { %1622 = dma.vmem_to_hbm [thread:$0]  (%p1920_p5), %s2191_s9, 1024, %s2189_s15, %s2197_s28, %s1840_s13, %s1840_s13, %s1841_s14  }
0x1911 PF: > { %p1628_p13 = scmp.ge.s32.totalorder %s1832_s27, 2  ;;  %s1359_s16 = sand.u32 1, %s1820_s24  }
0x1912   : > { %s1360_s17 = scalar_lea.sflag [#allocation3], %s1359_s16 }
0x1913   : > { %p1625_p0 = pnand %p1628_p13, %p1924_p6 }
0x1915   : > { %p1626_p1 = pneg %p1625_p0 }
0x1917   : > { %1815 = dma.done.wait (%p1626_p1), %s1360_s17, 1024  }
0x1918   : > { %1817 = vsyncadd (%p1626_p1), %s1360_s17, 4294966272  ;;  %p17_p2 = scmp.ge.s32.totalorder %s1907_s30, 4   ;;  %s2247_s24 = smov %s1824_s25 }
0x1919   : > { %s2248_s25 = smov %s1828_s26  ;;  %s2249_s26 = smov %s1918_s10 }
0x191a   : > { %s2250_s27 = smov %s1907_s30  ;;  %19 = sbr.rel (!%p17_p2) target bundleno = 3 (0x3), region = 83 }
0x191f   :  { %1365 = vsyncpa [#allocation3], 1 }
0x1920   :  { %1367 = vsyncpa [#allocation3 + $0x1], 1 }

</bundles_post_ra>
